<compile_context>
chip_gen: v6e
topology: v6e:2x2x1
jax: 0.10.0
libtpu: 0.0.40
codegen_flags: <defaults>
</compile_context>

<pallas_src>
import math
import functools

import jax
import jax.numpy as jnp
from jax.experimental import pallas as pl
from jax.experimental.pallas import tpu as pltpu


def _layernorm(y, g, b, eps=1e-5):
    # PyTorch LayerNorm: biased variance, eps inside rsqrt.  Two-pass variance
    # (mean of centered squares) avoids the E[x^2]-mu^2 cancellation risk.
    mu = jnp.mean(y, axis=-1, keepdims=True)
    d = y - mu
    var = jnp.mean(d * d, axis=-1, keepdims=True)
    return d * jax.lax.rsqrt(var + eps) * g + b


def encoder_layer_kernel(x_ref, wqkv_ref, bqkv_ref, wo_ref, bo_ref,
                         g1_ref, be1_ref, w1_ref, b1_ref,
                         w2_ref, b2_ref, g2_ref, be2_ref,
                         o_ref, acc_ref, *, n_heads):
    """One (batch element, layer) step.  acc_ref carries x across layers."""
    l = pl.program_id(1)

    @pl.when(l == 0)
    def _():
        acc_ref[...] = x_ref[...]

    x = acc_ref[...]                       # (S, D) f32 resident activation
    S, D = x.shape
    dh = D // n_heads

    # ---------------- Multi-head attention ------------------------------
    # Fused QKV projection, bf16 operands, f32 accumulation.
    xb = x.astype(jnp.bfloat16)
    qkv = jnp.dot(xb, wqkv_ref[...],
                  preferred_element_type=jnp.float32) + bqkv_ref[...]
    q = qkv[:, 0 * D:1 * D]                # 1/sqrt(dh) folded into Wq, bq
    k = qkv[:, 1 * D:2 * D]
    v = qkv[:, 2 * D:3 * D]

    # TODO(synk): at realistic head dims (>=64) fold heads into the
    # dot_general batch dim instead of this static per-head loop.
    ctx_heads = []
    for h in range(n_heads):
        sl = slice(h * dh, (h + 1) * dh)
        qh = q[:, sl].astype(jnp.bfloat16)
        kh = k[:, sl].astype(jnp.bfloat16)
        vh = v[:, sl].astype(jnp.bfloat16)
        # q @ k^T without materializing a transpose (contract last dims).
        s = jax.lax.dot_general(qh, kh, (((1,), (1,)), ((), ())),
                                preferred_element_type=jnp.float32)  # (S, S)
        s = s - jnp.max(s, axis=-1, keepdims=True)
        p = jnp.exp(s)
        p = p * pl.reciprocal(jnp.sum(p, axis=-1, keepdims=True), approx=True)
        ctx_heads.append(jnp.dot(p.astype(jnp.bfloat16), vh,
                                 preferred_element_type=jnp.float32))  # (S, dh)

    ctx = jnp.concatenate(ctx_heads, axis=-1)          # (S, D)
    # Single full-width output projection (instead of n_heads partial ones).
    att = jnp.dot(ctx.astype(jnp.bfloat16), wo_ref[...],
                  preferred_element_type=jnp.float32) + bo_ref[...]

    # Residual + LayerNorm1 (dropout is identity in eval mode).
    x = x + _layernorm(att, g1_ref[...], be1_ref[...])

    # --------- Position-wise feed-forward: fc2(relu(fc1(x))) ------------
    h1 = jnp.maximum(
        jnp.dot(x.astype(jnp.bfloat16), w1_ref[...],
                preferred_element_type=jnp.float32) + b1_ref[...], 0.0)
    ff = jnp.dot(h1.astype(jnp.bfloat16), w2_ref[...],
                 preferred_element_type=jnp.float32) + b2_ref[...]

    # Residual + LayerNorm2.
    x = x + _layernorm(ff, g2_ref[...], be2_ref[...])

    acc_ref[...] = x

    @pl.when(l == pl.num_programs(1) - 1)
    def _():
        o_ref[...] = x


def pack_stack_params(blocks, n_heads):
    """Stack per-block weights into (L, ...) arrays; fuse Wq/Wk/Wv, fold the
    1/sqrt(dh) scale into Wq/bq, store weight matrices in bf16."""
    n_dim = blocks[0]["wq"].shape[0]
    scale = 1.0 / math.sqrt(n_dim // n_heads)

    def stack(name, dtype=None):
        a = jnp.stack([b[name] for b in blocks])
        return a.astype(dtype) if dtype is not None else a

    wqkv = jnp.stack([jnp.concatenate([b["wq"] * scale, b["wk"], b["wv"]],
                                      axis=1) for b in blocks]).astype(jnp.bfloat16)
    bqkv = jnp.stack([jnp.concatenate([b["bq"] * scale, b["bk"], b["bv"]],
                                      axis=1) for b in blocks])          # f32
    return (wqkv, bqkv,
            stack("wo", jnp.bfloat16), stack("bo"),
            stack("g1"), stack("be1"),
            stack("w1", jnp.bfloat16), stack("b1"),
            stack("w2", jnp.bfloat16), stack("b2"),
            stack("g2"), stack("be2"))


def encoder_stack_pallas(x, stacked, n_heads):
    B, S, D = x.shape
    L = stacked[0].shape[0]
    dh = D // n_heads

    def lsel(b, l):   # per-layer weight selection (leading dim squeezed)
        return (l, 0, 0)

    def bsel(b, l):   # per-batch activation selection
        return (b, 0, 0)

    in_specs = [
        pl.BlockSpec((None, S, D), bsel),          # x
        pl.BlockSpec((None, D, 3 * D), lsel),      # wqkv
        pl.BlockSpec((None, 1, 3 * D), lsel),      # bqkv
        pl.BlockSpec((None, D, D), lsel),          # wo
        pl.BlockSpec((None, 1, D), lsel),          # bo
        pl.BlockSpec((None, 1, D), lsel),          # g1
        pl.BlockSpec((None, 1, D), lsel),          # be1
        pl.BlockSpec((None, D, D), lsel),          # w1
        pl.BlockSpec((None, 1, D), lsel),          # b1
        pl.BlockSpec((None, D, D), lsel),          # w2
        pl.BlockSpec((None, 1, D), lsel),          # b2
        pl.BlockSpec((None, 1, D), lsel),          # g2
        pl.BlockSpec((None, 1, D), lsel),          # be2
    ]
    out_specs = pl.BlockSpec((None, S, D), bsel)

    # VMEM budget: double-buffered bf16 per-layer weights + f32 activations,
    # QKV slab, per-head scores.  (Keeps the limit bounded on v7x's 64 MiB.)
    per_layer_w = 2 * (6 * D * D * 2 + 10 * 3 * D * 4)          # 2 buffers
    act_bytes = (6 * S * D + 3 * S * D + 2 * S * S) * 4
    vmem_limit = int(min(100 << 20, max(16 << 20, per_layer_w + 4 * act_bytes)))

    flops = B * L * (2 * S * D * 3 * D            # qkv projection
                     + n_heads * 4 * S * S * dh   # scores + context
                     + 2 * S * D * D              # output projection
                     + 4 * S * D * D)             # feed-forward
    cost = pl.CostEstimate(
        flops=flops,
        transcendentals=B * L * n_heads * S * S,
        bytes_accessed=int(B * L * 6 * D * D * 2 + 2 * B * S * D * 4))

    return pl.pallas_call(
        functools.partial(encoder_layer_kernel, n_heads=n_heads),
        out_shape=jax.ShapeDtypeStruct((B, S, D), jnp.float32),
        grid_spec=pltpu.PrefetchScalarGridSpec(
            num_scalar_prefetch=0,
            grid=(B, L),
            in_specs=in_specs,
            out_specs=out_specs,
            scratch_shapes=[pltpu.VMEM((S, D), jnp.float32)],
        ),
        compiler_params=pltpu.CompilerParams(
            dimension_semantics=("parallel", "arbitrary"),
            vmem_limit_bytes=vmem_limit),
        cost_estimate=cost,
    )(x, *stacked)


def positional_encoding(seq_len, d_model):
    pos = jnp.arange(seq_len, dtype=jnp.float32)[:, None]
    div = jnp.exp(jnp.arange(0, d_model, 2, dtype=jnp.float32)
                  * (-math.log(10000.0) / d_model))
    pe = jnp.zeros((seq_len, d_model), jnp.float32)
    pe = pe.at[:, 0::2].set(jnp.sin(pos * div))
    pe = pe.at[:, 1::2].set(jnp.cos(pos * div))
    return pe


def init_params(key, vocab_size, n_dim, n_blocks):
    def linear_w(k, d_in, d_out):
        return (jax.random.normal(k, (d_in, d_out), jnp.float32)
                / math.sqrt(d_in))

    keys = jax.random.split(key, 1 + n_blocks)
    params = {
        "emb": jax.random.normal(keys[0], (vocab_size, n_dim), jnp.float32) * 0.1,
        "blocks": [],
    }
    for i in range(n_blocks):
        bk = jax.random.split(keys[1 + i], 6)
        zeros = jnp.zeros((1, n_dim), jnp.float32)
        ones = jnp.ones((1, n_dim), jnp.float32)
        params["blocks"].append({
            "wq": linear_w(bk[0], n_dim, n_dim), "bq": zeros,
            "wk": linear_w(bk[1], n_dim, n_dim), "bk": zeros,
            "wv": linear_w(bk[2], n_dim, n_dim), "bv": zeros,
            "wo": linear_w(bk[3], n_dim, n_dim), "bo": zeros,
            "g1": ones, "be1": zeros,
            "w1": linear_w(bk[4], n_dim, n_dim), "b1": zeros,   # d_ff == n_dim
            "w2": linear_w(bk[5], n_dim, n_dim), "b2": zeros,
            "g2": ones, "be2": zeros,
        })
    return params


def encoder_forward(tokens, params, *, n_heads):
    n_dim = params["emb"].shape[1]
    # Embedding gather + positional encoding are plain-JAX glue (fused by XLA
    # under jit); everything from the first block onward is one Pallas kernel.
    x = jnp.take(params["emb"], tokens, axis=0) * math.sqrt(n_dim)   # [B, S, D]
    S = x.shape[1]
    x = x + positional_encoding(S, n_dim)[None, :, :]
    stacked = pack_stack_params(params["blocks"], n_heads)
    return encoder_stack_pallas(x, stacked, n_heads)


if __name__ == "__main__":
    VOCAB, N_DIM, N_HEADS, N_BLOCKS = 50, 32, 4, 2
    B, S = 2, 8

    key = jax.random.PRNGKey(0)
    k_tok, k_par = jax.random.split(key)
    tokens = jax.random.randint(k_tok, (B, S), 0, VOCAB, dtype=jnp.int32)
    params = init_params(k_par, VOCAB, N_DIM, N_BLOCKS)

    fwd = jax.jit(functools.partial(encoder_forward, n_heads=N_HEADS))
    out = fwd(tokens, params)
    jax.block_until_ready(out)
    assert out.shape == (B, S, N_DIM) and out.dtype == jnp.float32
    print("KERNEL_OK")
</pallas_src>

<mosaic_0001>
module attributes {stable_mosaic.version = 11 : i64} {
  func.func @encoder_layer_kernel(%arg0: i32, %arg1: i32, %arg2: memref<1x8x32xf32, #tpu.memory_space<vmem>>, %arg3: memref<1x32x96xbf16, #tpu.memory_space<vmem>>, %arg4: memref<1x1x96xf32, #tpu.memory_space<vmem>>, %arg5: memref<1x32x32xbf16, #tpu.memory_space<vmem>>, %arg6: memref<1x1x32xf32, #tpu.memory_space<vmem>>, %arg7: memref<1x1x32xf32, #tpu.memory_space<vmem>>, %arg8: memref<1x1x32xf32, #tpu.memory_space<vmem>>, %arg9: memref<1x32x32xbf16, #tpu.memory_space<vmem>>, %arg10: memref<1x1x32xf32, #tpu.memory_space<vmem>>, %arg11: memref<1x32x32xbf16, #tpu.memory_space<vmem>>, %arg12: memref<1x1x32xf32, #tpu.memory_space<vmem>>, %arg13: memref<1x1x32xf32, #tpu.memory_space<vmem>>, %arg14: memref<1x1x32xf32, #tpu.memory_space<vmem>>, %arg15: memref<1x8x32xf32, #tpu.memory_space<vmem>>, %arg16: memref<8x32xf32, #tpu.memory_space<vmem>>) attributes {dimension_semantics = [#tpu.dimension_semantics<parallel>, #tpu.dimension_semantics<arbitrary>], iteration_bounds = array<i64: 2, 2>, scalar_prefetch = 0 : i64, scratch_operands = 1 : i64, tpu.core_type = #tpu.core_type<tc>, window_params = [{transform_indices = @transform_0, window_bounds = array<i64: 1, 8, 32>}, {transform_indices = @transform_1, window_bounds = array<i64: 1, 32, 96>}, {transform_indices = @transform_2, window_bounds = array<i64: 1, 1, 96>}, {transform_indices = @transform_3, window_bounds = array<i64: 1, 32, 32>}, {transform_indices = @transform_4, window_bounds = array<i64: 1, 1, 32>}, {transform_indices = @transform_5, window_bounds = array<i64: 1, 1, 32>}, {transform_indices = @transform_6, window_bounds = array<i64: 1, 1, 32>}, {transform_indices = @transform_7, window_bounds = array<i64: 1, 32, 32>}, {transform_indices = @transform_8, window_bounds = array<i64: 1, 1, 32>}, {transform_indices = @transform_9, window_bounds = array<i64: 1, 32, 32>}, {transform_indices = @transform_10, window_bounds = array<i64: 1, 1, 32>}, {transform_indices = @transform_11, window_bounds = array<i64: 1, 1, 32>}, {transform_indices = @transform_12, window_bounds = array<i64: 1, 1, 32>}, {transform_indices = @transform_13, window_bounds = array<i64: 1, 8, 32>}]} {
    %c0_i32 = arith.constant 0 : i32
    %0 = arith.cmpi eq, %arg1, %c0_i32 : i32
    %1 = arith.extui %0 : i1 to i32
    %c0_i32_0 = arith.constant 0 : i32
    %2 = arith.cmpi ne, %1, %c0_i32_0 : i32
    scf.if %2 {
      %c0_71 = arith.constant 0 : index
      %c0_72 = arith.constant 0 : index
      %c0_73 = arith.constant 0 : index
      %172 = vector.load %arg2[%c0_71, %c0_72, %c0_73] : memref<1x8x32xf32, #tpu.memory_space<vmem>>, vector<1x8x32xf32>
      %173 = vector.shape_cast %172 : vector<1x8x32xf32> to vector<8x32xf32>
      %c0_74 = arith.constant 0 : index
      %c0_75 = arith.constant 0 : index
      %174 = vector.load %arg16[%c0_74, %c0_75] : memref<8x32xf32, #tpu.memory_space<vmem>>, vector<8x32xf32>
      tpu.vector_store %arg16[%c0_74, %c0_75], %173 {strides = array<i32>} : memref<8x32xf32, #tpu.memory_space<vmem>>, vector<8x32xf32>,
    } else {
    }
    %c0 = arith.constant 0 : index
    %c0_1 = arith.constant 0 : index
    %3 = vector.load %arg16[%c0, %c0_1] : memref<8x32xf32, #tpu.memory_space<vmem>>, vector<8x32xf32>
    %4 = arith.truncf %3 : vector<8x32xf32> to vector<8x32xbf16>
    %c0_2 = arith.constant 0 : index
    %c0_3 = arith.constant 0 : index
    %c0_4 = arith.constant 0 : index
    %5 = vector.load %arg3[%c0_2, %c0_3, %c0_4] : memref<1x32x96xbf16, #tpu.memory_space<vmem>>, vector<1x32x96xbf16>
    %6 = vector.shape_cast %5 : vector<1x32x96xbf16> to vector<32x96xbf16>
    %cst = arith.constant dense<0.000000e+00> : vector<8x96xf32>
    %7 = tpu.matmul %4, %6, %cst {dimension_numbers = #tpu.dot_dimension_numbers<[1], [0], [0], [1], [0, 0, 1, 1], [], []>} : vector<8x32xbf16>, vector<32x96xbf16>, vector<8x96xf32> -> vector<8x96xf32>
    %c0_5 = arith.constant 0 : index
    %c0_6 = arith.constant 0 : index
    %c0_7 = arith.constant 0 : index
    %8 = vector.load %arg4[%c0_5, %c0_6, %c0_7] : memref<1x1x96xf32, #tpu.memory_space<vmem>>, vector<1x1x96xf32>
    %9 = vector.shape_cast %8 : vector<1x1x96xf32> to vector<1x96xf32>
    %10 = vector.broadcast %9 : vector<1x96xf32> to vector<8x96xf32>
    %11 = arith.addf %7, %10 : vector<8x96xf32>
    %12 = vector.extract_strided_slice %11 {offsets = [0, 0], sizes = [8, 32], strides = [1, 1]} : vector<8x96xf32> to vector<8x32xf32>
    %13 = vector.extract_strided_slice %11 {offsets = [0, 32], sizes = [8, 32], strides = [1, 1]} : vector<8x96xf32> to vector<8x32xf32>
    %14 = vector.extract_strided_slice %11 {offsets = [0, 64], sizes = [8, 32], strides = [1, 1]} : vector<8x96xf32> to vector<8x32xf32>
    %15 = vector.extract_strided_slice %12 {offsets = [0, 0], sizes = [8, 8], strides = [1, 1]} : vector<8x32xf32> to vector<8x8xf32>
    %16 = arith.truncf %15 : vector<8x8xf32> to vector<8x8xbf16>
    %17 = vector.extract_strided_slice %13 {offsets = [0, 0], sizes = [8, 8], strides = [1, 1]} : vector<8x32xf32> to vector<8x8xf32>
    %18 = arith.truncf %17 : vector<8x8xf32> to vector<8x8xbf16>
    %19 = vector.extract_strided_slice %14 {offsets = [0, 0], sizes = [8, 8], strides = [1, 1]} : vector<8x32xf32> to vector<8x8xf32>
    %20 = arith.truncf %19 : vector<8x8xf32> to vector<8x8xbf16>
    %cst_8 = arith.constant dense<0.000000e+00> : vector<8x8xf32>
    %21 = tpu.matmul %16, %18, %cst_8 {dimension_numbers = #tpu.dot_dimension_numbers<[1], [1], [0], [0], [0, 0, 1, 0], [], []>} : vector<8x8xbf16>, vector<8x8xbf16>, vector<8x8xf32> -> vector<8x8xf32>
    %cst_9 = arith.constant dense<0xFF800000> : vector<8xf32>
    %22 = vector.multi_reduction <maximumf>, %21, %cst_9 [1] : vector<8x8xf32> to vector<8xf32>
    %23 = vector.shape_cast %22 : vector<8xf32> to vector<8x1xf32>
    %24 = vector.broadcast %23 : vector<8x1xf32> to vector<8x8xf32>
    %25 = arith.subf %21, %24 : vector<8x8xf32>
    %26 = math.exp %25 : vector<8x8xf32>
    %cst_10 = arith.constant dense<0.000000e+00> : vector<8xf32>
    %27 = vector.multi_reduction <add>, %26, %cst_10 [1] : vector<8x8xf32> to vector<8xf32>
    %28 = vector.shape_cast %27 : vector<8xf32> to vector<8x1xf32>
    %29 = tpu.reciprocal %28 {approx = true} : vector<8x1xf32> -> vector<8x1xf32>
    %30 = vector.broadcast %29 : vector<8x1xf32> to vector<8x8xf32>
    %31 = arith.mulf %26, %30 : vector<8x8xf32>
    %32 = arith.truncf %31 : vector<8x8xf32> to vector<8x8xbf16>
    %cst_11 = arith.constant dense<0.000000e+00> : vector<8x8xf32>
    %33 = tpu.matmul %32, %20, %cst_11 {dimension_numbers = #tpu.dot_dimension_numbers<[1], [0], [0], [1], [0, 0, 1, 1], [], []>} : vector<8x8xbf16>, vector<8x8xbf16>, vector<8x8xf32> -> vector<8x8xf32>
    %34 = vector.extract_strided_slice %12 {offsets = [0, 8], sizes = [8, 8], strides = [1, 1]} : vector<8x32xf32> to vector<8x8xf32>
    %35 = arith.truncf %34 : vector<8x8xf32> to vector<8x8xbf16>
    %36 = vector.extract_strided_slice %13 {offsets = [0, 8], sizes = [8, 8], strides = [1, 1]} : vector<8x32xf32> to vector<8x8xf32>
    %37 = arith.truncf %36 : vector<8x8xf32> to vector<8x8xbf16>
    %38 = vector.extract_strided_slice %14 {offsets = [0, 8], sizes = [8, 8], strides = [1, 1]} : vector<8x32xf32> to vector<8x8xf32>
    %39 = arith.truncf %38 : vector<8x8xf32> to vector<8x8xbf16>
    %cst_12 = arith.constant dense<0.000000e+00> : vector<8x8xf32>
    %40 = tpu.matmul %35, %37, %cst_12 {dimension_numbers = #tpu.dot_dimension_numbers<[1], [1], [0], [0], [0, 0, 1, 0], [], []>} : vector<8x8xbf16>, vector<8x8xbf16>, vector<8x8xf32> -> vector<8x8xf32>
    %cst_13 = arith.constant dense<0xFF800000> : vector<8xf32>
    %41 = vector.multi_reduction <maximumf>, %40, %cst_13 [1] : vector<8x8xf32> to vector<8xf32>
    %42 = vector.shape_cast %41 : vector<8xf32> to vector<8x1xf32>
    %43 = vector.broadcast %42 : vector<8x1xf32> to vector<8x8xf32>
    %44 = arith.subf %40, %43 : vector<8x8xf32>
    %45 = math.exp %44 : vector<8x8xf32>
    %cst_14 = arith.constant dense<0.000000e+00> : vector<8xf32>
    %46 = vector.multi_reduction <add>, %45, %cst_14 [1] : vector<8x8xf32> to vector<8xf32>
    %47 = vector.shape_cast %46 : vector<8xf32> to vector<8x1xf32>
    %48 = tpu.reciprocal %47 {approx = true} : vector<8x1xf32> -> vector<8x1xf32>
    %49 = vector.broadcast %48 : vector<8x1xf32> to vector<8x8xf32>
    %50 = arith.mulf %45, %49 : vector<8x8xf32>
    %51 = arith.truncf %50 : vector<8x8xf32> to vector<8x8xbf16>
    %cst_15 = arith.constant dense<0.000000e+00> : vector<8x8xf32>
    %52 = tpu.matmul %51, %39, %cst_15 {dimension_numbers = #tpu.dot_dimension_numbers<[1], [0], [0], [1], [0, 0, 1, 1], [], []>} : vector<8x8xbf16>, vector<8x8xbf16>, vector<8x8xf32> -> vector<8x8xf32>
    %53 = vector.extract_strided_slice %12 {offsets = [0, 16], sizes = [8, 8], strides = [1, 1]} : vector<8x32xf32> to vector<8x8xf32>
    %54 = arith.truncf %53 : vector<8x8xf32> to vector<8x8xbf16>
    %55 = vector.extract_strided_slice %13 {offsets = [0, 16], sizes = [8, 8], strides = [1, 1]} : vector<8x32xf32> to vector<8x8xf32>
    %56 = arith.truncf %55 : vector<8x8xf32> to vector<8x8xbf16>
    %57 = vector.extract_strided_slice %14 {offsets = [0, 16], sizes = [8, 8], strides = [1, 1]} : vector<8x32xf32> to vector<8x8xf32>
    %58 = arith.truncf %57 : vector<8x8xf32> to vector<8x8xbf16>
    %cst_16 = arith.constant dense<0.000000e+00> : vector<8x8xf32>
    %59 = tpu.matmul %54, %56, %cst_16 {dimension_numbers = #tpu.dot_dimension_numbers<[1], [1], [0], [0], [0, 0, 1, 0], [], []>} : vector<8x8xbf16>, vector<8x8xbf16>, vector<8x8xf32> -> vector<8x8xf32>
    %cst_17 = arith.constant dense<0xFF800000> : vector<8xf32>
    %60 = vector.multi_reduction <maximumf>, %59, %cst_17 [1] : vector<8x8xf32> to vector<8xf32>
    %61 = vector.shape_cast %60 : vector<8xf32> to vector<8x1xf32>
    %62 = vector.broadcast %61 : vector<8x1xf32> to vector<8x8xf32>
    %63 = arith.subf %59, %62 : vector<8x8xf32>
    %64 = math.exp %63 : vector<8x8xf32>
    %cst_18 = arith.constant dense<0.000000e+00> : vector<8xf32>
    %65 = vector.multi_reduction <add>, %64, %cst_18 [1] : vector<8x8xf32> to vector<8xf32>
    %66 = vector.shape_cast %65 : vector<8xf32> to vector<8x1xf32>
    %67 = tpu.reciprocal %66 {approx = true} : vector<8x1xf32> -> vector<8x1xf32>
    %68 = vector.broadcast %67 : vector<8x1xf32> to vector<8x8xf32>
    %69 = arith.mulf %64, %68 : vector<8x8xf32>
    %70 = arith.truncf %69 : vector<8x8xf32> to vector<8x8xbf16>
    %cst_19 = arith.constant dense<0.000000e+00> : vector<8x8xf32>
    %71 = tpu.matmul %70, %58, %cst_19 {dimension_numbers = #tpu.dot_dimension_numbers<[1], [0], [0], [1], [0, 0, 1, 1], [], []>} : vector<8x8xbf16>, vector<8x8xbf16>, vector<8x8xf32> -> vector<8x8xf32>
    %72 = vector.extract_strided_slice %12 {offsets = [0, 24], sizes = [8, 8], strides = [1, 1]} : vector<8x32xf32> to vector<8x8xf32>
    %73 = arith.truncf %72 : vector<8x8xf32> to vector<8x8xbf16>
    %74 = vector.extract_strided_slice %13 {offsets = [0, 24], sizes = [8, 8], strides = [1, 1]} : vector<8x32xf32> to vector<8x8xf32>
    %75 = arith.truncf %74 : vector<8x8xf32> to vector<8x8xbf16>
    %76 = vector.extract_strided_slice %14 {offsets = [0, 24], sizes = [8, 8], strides = [1, 1]} : vector<8x32xf32> to vector<8x8xf32>
    %77 = arith.truncf %76 : vector<8x8xf32> to vector<8x8xbf16>
    %cst_20 = arith.constant dense<0.000000e+00> : vector<8x8xf32>
    %78 = tpu.matmul %73, %75, %cst_20 {dimension_numbers = #tpu.dot_dimension_numbers<[1], [1], [0], [0], [0, 0, 1, 0], [], []>} : vector<8x8xbf16>, vector<8x8xbf16>, vector<8x8xf32> -> vector<8x8xf32>
    %cst_21 = arith.constant dense<0xFF800000> : vector<8xf32>
    %79 = vector.multi_reduction <maximumf>, %78, %cst_21 [1] : vector<8x8xf32> to vector<8xf32>
    %80 = vector.shape_cast %79 : vector<8xf32> to vector<8x1xf32>
    %81 = vector.broadcast %80 : vector<8x1xf32> to vector<8x8xf32>
    %82 = arith.subf %78, %81 : vector<8x8xf32>
    %83 = math.exp %82 : vector<8x8xf32>
    %cst_22 = arith.constant dense<0.000000e+00> : vector<8xf32>
    %84 = vector.multi_reduction <add>, %83, %cst_22 [1] : vector<8x8xf32> to vector<8xf32>
    %85 = vector.shape_cast %84 : vector<8xf32> to vector<8x1xf32>
    %86 = tpu.reciprocal %85 {approx = true} : vector<8x1xf32> -> vector<8x1xf32>
    %87 = vector.broadcast %86 : vector<8x1xf32> to vector<8x8xf32>
    %88 = arith.mulf %83, %87 : vector<8x8xf32>
    %89 = arith.truncf %88 : vector<8x8xf32> to vector<8x8xbf16>
    %cst_23 = arith.constant dense<0.000000e+00> : vector<8x8xf32>
    %90 = tpu.matmul %89, %77, %cst_23 {dimension_numbers = #tpu.dot_dimension_numbers<[1], [0], [0], [1], [0, 0, 1, 1], [], []>} : vector<8x8xbf16>, vector<8x8xbf16>, vector<8x8xf32> -> vector<8x8xf32>
    %91 = tpu.concatenate %33, %52, %71, %90 in 1 : vector<8x8xf32>, vector<8x8xf32>, vector<8x8xf32>, vector<8x8xf32> -> vector<8x32xf32>
    %92 = arith.truncf %91 : vector<8x32xf32> to vector<8x32xbf16>
    %c0_24 = arith.constant 0 : index
    %c0_25 = arith.constant 0 : index
    %c0_26 = arith.constant 0 : index
    %93 = vector.load %arg5[%c0_24, %c0_25, %c0_26] : memref<1x32x32xbf16, #tpu.memory_space<vmem>>, vector<1x32x32xbf16>
    %94 = vector.shape_cast %93 : vector<1x32x32xbf16> to vector<32x32xbf16>
    %cst_27 = arith.constant dense<0.000000e+00> : vector<8x32xf32>
    %95 = tpu.matmul %92, %94, %cst_27 {dimension_numbers = #tpu.dot_dimension_numbers<[1], [0], [0], [1], [0, 0, 1, 1], [], []>} : vector<8x32xbf16>, vector<32x32xbf16>, vector<8x32xf32> -> vector<8x32xf32>
    %c0_28 = arith.constant 0 : index
    %c0_29 = arith.constant 0 : index
    %c0_30 = arith.constant 0 : index
    %96 = vector.load %arg6[%c0_28, %c0_29, %c0_30] : memref<1x1x32xf32, #tpu.memory_space<vmem>>, vector<1x1x32xf32>
    %97 = vector.shape_cast %96 : vector<1x1x32xf32> to vector<1x32xf32>
    %98 = vector.broadcast %97 : vector<1x32xf32> to vector<8x32xf32>
    %99 = arith.addf %95, %98 : vector<8x32xf32>
    %c0_31 = arith.constant 0 : index
    %c0_32 = arith.constant 0 : index
    %c0_33 = arith.constant 0 : index
    %100 = vector.load %arg7[%c0_31, %c0_32, %c0_33] : memref<1x1x32xf32, #tpu.memory_space<vmem>>, vector<1x1x32xf32>
    %101 = vector.shape_cast %100 : vector<1x1x32xf32> to vector<1x32xf32>
    %c0_34 = arith.constant 0 : index
    %c0_35 = arith.constant 0 : index
    %c0_36 = arith.constant 0 : index
    %102 = vector.load %arg8[%c0_34, %c0_35, %c0_36] : memref<1x1x32xf32, #tpu.memory_space<vmem>>, vector<1x1x32xf32>
    %103 = vector.shape_cast %102 : vector<1x1x32xf32> to vector<1x32xf32>
    %cst_37 = arith.constant dense<0.000000e+00> : vector<8xf32>
    %104 = vector.multi_reduction <add>, %99, %cst_37 [1] : vector<8x32xf32> to vector<8xf32>
    %105 = vector.shape_cast %104 : vector<8xf32> to vector<8x1xf32>
    %cst_38 = arith.constant 3.200000e+01 : f32
    %106 = vector.broadcast %cst_38 : f32 to vector<8x1xf32>
    %107 = arith.divf %105, %106 : vector<8x1xf32>
    %108 = vector.broadcast %107 : vector<8x1xf32> to vector<8x32xf32>
    %109 = arith.subf %99, %108 : vector<8x32xf32>
    %110 = arith.mulf %109, %109 : vector<8x32xf32>
    %cst_39 = arith.constant dense<0.000000e+00> : vector<8xf32>
    %111 = vector.multi_reduction <add>, %110, %cst_39 [1] : vector<8x32xf32> to vector<8xf32>
    %112 = vector.shape_cast %111 : vector<8xf32> to vector<8x1xf32>
    %cst_40 = arith.constant 3.200000e+01 : f32
    %113 = vector.broadcast %cst_40 : f32 to vector<8x1xf32>
    %114 = arith.divf %112, %113 : vector<8x1xf32>
    %cst_41 = arith.constant 9.99999974E-6 : f32
    %115 = vector.broadcast %cst_41 : f32 to vector<8x1xf32>
    %116 = arith.addf %114, %115 : vector<8x1xf32>
    %117 = math.rsqrt %116 : vector<8x1xf32>
    %118 = vector.broadcast %117 : vector<8x1xf32> to vector<8x32xf32>
    %119 = arith.mulf %109, %118 : vector<8x32xf32>
    %120 = vector.broadcast %101 : vector<1x32xf32> to vector<8x32xf32>
    %121 = arith.mulf %119, %120 : vector<8x32xf32>
    %122 = vector.broadcast %103 : vector<1x32xf32> to vector<8x32xf32>
    %123 = arith.addf %121, %122 : vector<8x32xf32>
    %124 = arith.addf %3, %123 : vector<8x32xf32>
    %125 = arith.truncf %124 : vector<8x32xf32> to vector<8x32xbf16>
    %c0_42 = arith.constant 0 : index
    %c0_43 = arith.constant 0 : index
    %c0_44 = arith.constant 0 : index
    %126 = vector.load %arg9[%c0_42, %c0_43, %c0_44] : memref<1x32x32xbf16, #tpu.memory_space<vmem>>, vector<1x32x32xbf16>
    %127 = vector.shape_cast %126 : vector<1x32x32xbf16> to vector<32x32xbf16>
    %cst_45 = arith.constant dense<0.000000e+00> : vector<8x32xf32>
    %128 = tpu.matmul %125, %127, %cst_45 {dimension_numbers = #tpu.dot_dimension_numbers<[1], [0], [0], [1], [0, 0, 1, 1], [], []>} : vector<8x32xbf16>, vector<32x32xbf16>, vector<8x32xf32> -> vector<8x32xf32>
    %c0_46 = arith.constant 0 : index
    %c0_47 = arith.constant 0 : index
    %c0_48 = arith.constant 0 : index
    %129 = vector.load %arg10[%c0_46, %c0_47, %c0_48] : memref<1x1x32xf32, #tpu.memory_space<vmem>>, vector<1x1x32xf32>
    %130 = vector.shape_cast %129 : vector<1x1x32xf32> to vector<1x32xf32>
    %131 = vector.broadcast %130 : vector<1x32xf32> to vector<8x32xf32>
    %132 = arith.addf %128, %131 : vector<8x32xf32>
    %cst_49 = arith.constant 0.000000e+00 : f32
    %133 = vector.broadcast %cst_49 : f32 to vector<8x32xf32>
    %134 = arith.maximumf %132, %133 : vector<8x32xf32>
    %135 = arith.truncf %134 : vector<8x32xf32> to vector<8x32xbf16>
    %c0_50 = arith.constant 0 : index
    %c0_51 = arith.constant 0 : index
    %c0_52 = arith.constant 0 : index
    %136 = vector.load %arg11[%c0_50, %c0_51, %c0_52] : memref<1x32x32xbf16, #tpu.memory_space<vmem>>, vector<1x32x32xbf16>
    %137 = vector.shape_cast %136 : vector<1x32x32xbf16> to vector<32x32xbf16>
    %cst_53 = arith.constant dense<0.000000e+00> : vector<8x32xf32>
    %138 = tpu.matmul %135, %137, %cst_53 {dimension_numbers = #tpu.dot_dimension_numbers<[1], [0], [0], [1], [0, 0, 1, 1], [], []>} : vector<8x32xbf16>, vector<32x32xbf16>, vector<8x32xf32> -> vector<8x32xf32>
    %c0_54 = arith.constant 0 : index
    %c0_55 = arith.constant 0 : index
    %c0_56 = arith.constant 0 : index
    %139 = vector.load %arg12[%c0_54, %c0_55, %c0_56] : memref<1x1x32xf32, #tpu.memory_space<vmem>>, vector<1x1x32xf32>
    %140 = vector.shape_cast %139 : vector<1x1x32xf32> to vector<1x32xf32>
    %141 = vector.broadcast %140 : vector<1x32xf32> to vector<8x32xf32>
    %142 = arith.addf %138, %141 : vector<8x32xf32>
    %c0_57 = arith.constant 0 : index
    %c0_58 = arith.constant 0 : index
    %c0_59 = arith.constant 0 : index
    %143 = vector.load %arg13[%c0_57, %c0_58, %c0_59] : memref<1x1x32xf32, #tpu.memory_space<vmem>>, vector<1x1x32xf32>
    %144 = vector.shape_cast %143 : vector<1x1x32xf32> to vector<1x32xf32>
    %c0_60 = arith.constant 0 : index
    %c0_61 = arith.constant 0 : index
    %c0_62 = arith.constant 0 : index
    %145 = vector.load %arg14[%c0_60, %c0_61, %c0_62] : memref<1x1x32xf32, #tpu.memory_space<vmem>>, vector<1x1x32xf32>
    %146 = vector.shape_cast %145 : vector<1x1x32xf32> to vector<1x32xf32>
    %cst_63 = arith.constant dense<0.000000e+00> : vector<8xf32>
    %147 = vector.multi_reduction <add>, %142, %cst_63 [1] : vector<8x32xf32> to vector<8xf32>
    %148 = vector.shape_cast %147 : vector<8xf32> to vector<8x1xf32>
    %cst_64 = arith.constant 3.200000e+01 : f32
    %149 = vector.broadcast %cst_64 : f32 to vector<8x1xf32>
    %150 = arith.divf %148, %149 : vector<8x1xf32>
    %151 = vector.broadcast %150 : vector<8x1xf32> to vector<8x32xf32>
    %152 = arith.subf %142, %151 : vector<8x32xf32>
    %153 = arith.mulf %152, %152 : vector<8x32xf32>
    %cst_65 = arith.constant dense<0.000000e+00> : vector<8xf32>
    %154 = vector.multi_reduction <add>, %153, %cst_65 [1] : vector<8x32xf32> to vector<8xf32>
    %155 = vector.shape_cast %154 : vector<8xf32> to vector<8x1xf32>
    %cst_66 = arith.constant 3.200000e+01 : f32
    %156 = vector.broadcast %cst_66 : f32 to vector<8x1xf32>
    %157 = arith.divf %155, %156 : vector<8x1xf32>
    %cst_67 = arith.constant 9.99999974E-6 : f32
    %158 = vector.broadcast %cst_67 : f32 to vector<8x1xf32>
    %159 = arith.addf %157, %158 : vector<8x1xf32>
    %160 = math.rsqrt %159 : vector<8x1xf32>
    %161 = vector.broadcast %160 : vector<8x1xf32> to vector<8x32xf32>
    %162 = arith.mulf %152, %161 : vector<8x32xf32>
    %163 = vector.broadcast %144 : vector<1x32xf32> to vector<8x32xf32>
    %164 = arith.mulf %162, %163 : vector<8x32xf32>
    %165 = vector.broadcast %146 : vector<1x32xf32> to vector<8x32xf32>
    %166 = arith.addf %164, %165 : vector<8x32xf32>
    %167 = arith.addf %124, %166 : vector<8x32xf32>
    %c0_68 = arith.constant 0 : index
    %c0_69 = arith.constant 0 : index
    %168 = vector.load %arg16[%c0_68, %c0_69] : memref<8x32xf32, #tpu.memory_space<vmem>>, vector<8x32xf32>
    tpu.vector_store %arg16[%c0_68, %c0_69], %167 {strides = array<i32>} : memref<8x32xf32, #tpu.memory_space<vmem>>, vector<8x32xf32>,
    %c1_i32 = arith.constant 1 : i32
    %169 = arith.cmpi eq, %arg1, %c1_i32 : i32
    %170 = arith.extui %169 : i1 to i32
    %c0_i32_70 = arith.constant 0 : i32
    %171 = arith.cmpi ne, %170, %c0_i32_70 : i32
    scf.if %171 {
      %c0_71 = arith.constant 0 : index
      %c0_72 = arith.constant 0 : index
      %c0_73 = arith.constant 0 : index
      %172 = vector.load %arg15[%c0_71, %c0_72, %c0_73] : memref<1x8x32xf32, #tpu.memory_space<vmem>>, vector<1x8x32xf32>
      %173 = vector.shape_cast %172 : vector<1x8x32xf32> to vector<8x32xf32>
      %174 = vector.shape_cast %167 : vector<8x32xf32> to vector<1x8x32xf32>
      tpu.vector_store %arg15[%c0_71, %c0_72, %c0_73], %174 {strides = array<i32>} : memref<1x8x32xf32, #tpu.memory_space<vmem>>, vector<1x8x32xf32>,
    } else {
    }
    return
  }
  func.func @transform_0(%arg0: i32, %arg1: i32) -> (i32, i32, i32) {
    %c0_i32 = arith.constant 0 : i32
    %c0_i32_0 = arith.constant 0 : i32
    %c0_i32_1 = arith.constant 0 : i32
    return %arg0, %c0_i32, %c0_i32_0 : i32, i32, i32
  }
  func.func @transform_1(%arg0: i32, %arg1: i32) -> (i32, i32, i32) {
    %c0_i32 = arith.constant 0 : i32
    %c0_i32_0 = arith.constant 0 : i32
    %c0_i32_1 = arith.constant 0 : i32
    return %arg1, %c0_i32, %c0_i32_0 : i32, i32, i32
  }
  func.func @transform_2(%arg0: i32, %arg1: i32) -> (i32, i32, i32) {
    %c0_i32 = arith.constant 0 : i32
    %c0_i32_0 = arith.constant 0 : i32
    %c0_i32_1 = arith.constant 0 : i32
    return %arg1, %c0_i32, %c0_i32_0 : i32, i32, i32
  }
  func.func @transform_3(%arg0: i32, %arg1: i32) -> (i32, i32, i32) {
    %c0_i32 = arith.constant 0 : i32
    %c0_i32_0 = arith.constant 0 : i32
    %c0_i32_1 = arith.constant 0 : i32
    return %arg1, %c0_i32, %c0_i32_0 : i32, i32, i32
  }
  func.func @transform_4(%arg0: i32, %arg1: i32) -> (i32, i32, i32) {
    %c0_i32 = arith.constant 0 : i32
    %c0_i32_0 = arith.constant 0 : i32
    %c0_i32_1 = arith.constant 0 : i32
    return %arg1, %c0_i32, %c0_i32_0 : i32, i32, i32
  }
  func.func @transform_5(%arg0: i32, %arg1: i32) -> (i32, i32, i32) {
    %c0_i32 = arith.constant 0 : i32
    %c0_i32_0 = arith.constant 0 : i32
    %c0_i32_1 = arith.constant 0 : i32
    return %arg1, %c0_i32, %c0_i32_0 : i32, i32, i32
  }
  func.func @transform_6(%arg0: i32, %arg1: i32) -> (i32, i32, i32) {
    %c0_i32 = arith.constant 0 : i32
    %c0_i32_0 = arith.constant 0 : i32
    %c0_i32_1 = arith.constant 0 : i32
    return %arg1, %c0_i32, %c0_i32_0 : i32, i32, i32
  }
  func.func @transform_7(%arg0: i32, %arg1: i32) -> (i32, i32, i32) {
    %c0_i32 = arith.constant 0 : i32
    %c0_i32_0 = arith.constant 0 : i32
    %c0_i32_1 = arith.constant 0 : i32
    return %arg1, %c0_i32, %c0_i32_0 : i32, i32, i32
  }
  func.func @transform_8(%arg0: i32, %arg1: i32) -> (i32, i32, i32) {
    %c0_i32 = arith.constant 0 : i32
    %c0_i32_0 = arith.constant 0 : i32
    %c0_i32_1 = arith.constant 0 : i32
    return %arg1, %c0_i32, %c0_i32_0 : i32, i32, i32
  }
  func.func @transform_9(%arg0: i32, %arg1: i32) -> (i32, i32, i32) {
    %c0_i32 = arith.constant 0 : i32
    %c0_i32_0 = arith.constant 0 : i32
    %c0_i32_1 = arith.constant 0 : i32
    return %arg1, %c0_i32, %c0_i32_0 : i32, i32, i32
  }
  func.func @transform_10(%arg0: i32, %arg1: i32) -> (i32, i32, i32) {
    %c0_i32 = arith.constant 0 : i32
    %c0_i32_0 = arith.constant 0 : i32
    %c0_i32_1 = arith.constant 0 : i32
    return %arg1, %c0_i32, %c0_i32_0 : i32, i32, i32
  }
  func.func @transform_11(%arg0: i32, %arg1: i32) -> (i32, i32, i32) {
    %c0_i32 = arith.constant 0 : i32
    %c0_i32_0 = arith.constant 0 : i32
    %c0_i32_1 = arith.constant 0 : i32
    return %arg1, %c0_i32, %c0_i32_0 : i32, i32, i32
  }
  func.func @transform_12(%arg0: i32, %arg1: i32) -> (i32, i32, i32) {
    %c0_i32 = arith.constant 0 : i32
    %c0_i32_0 = arith.constant 0 : i32
    %c0_i32_1 = arith.constant 0 : i32
    return %arg1, %c0_i32, %c0_i32_0 : i32, i32, i32
  }
  func.func @transform_13(%arg0: i32, %arg1: i32) -> (i32, i32, i32) {
    %c0_i32 = arith.constant 0 : i32
    %c0_i32_0 = arith.constant 0 : i32
    %c0_i32_1 = arith.constant 0 : i32
    return %arg0, %c0_i32, %c0_i32_0 : i32, i32, i32
  }
}

</mosaic_0001>

<bundles_post_ra>
// kernel: encoder_forward.1
= control target key start
LH: loop header
LB: loop body
LE: loop exit
PB: predicated region body
PF: predicated region fallthrough
CT: control target
= control target key end

     0   :  { %s2433_s0 = inlined_call_operand.vmem [shape: f32[2,8,32], index: 0, kind: input, shape index: {}]   ;;  %s2434_s1 = inlined_call_operand.vmem [shape: bf16[2,32,96], index: 1, kind: input, shape index: {}]   ;;  %s2435_s2 = inlined_call_operand.vmem [shape: f32[2,1,96], index: 2, kind: input, shape index: {}]   ;;  %s2436_s3 = inlined_call_operand.vmem [shape: bf16[2,32,32], index: 3, kind: input, shape index: {}]   ;;  %s2437_s4 = inlined_call_operand.vmem [shape: f32[2,1,32], index: 4, kind: input, shape index: {}]   ;;  %s2438_s5 = inlined_call_operand.vmem [shape: f32[2,1,32], index: 5, kind: input, shape index: {}]   ;;  %s2439_s6 = inlined_call_operand.vmem [shape: f32[2,1,32], index: 6, kind: input, shape index: {}]   ;;  %s2440_s7 = inlined_call_operand.vmem [shape: bf16[2,32,32], index: 7, kind: input, shape index: {}]   ;;  %s2441_s8 = inlined_call_operand.vmem [shape: f32[2,1,32], index: 8, kind: input, shape index: {}]   ;;  %s2442_s9 = inlined_call_operand.vmem [shape: bf16[2,32,32], index: 9, kind: input, shape index: {}]   ;;  %s2443_s10 = inlined_call_operand.vmem [shape: f32[2,1,32], index: 10, kind: input, shape index: {}]   ;;  %s2444_s11 = inlined_call_operand.vmem [shape: f32[2,1,32], index: 11, kind: input, shape index: {}]   ;;  %s2445_s12 = inlined_call_operand.vmem [shape: f32[2,1,32], index: 12, kind: input, shape index: {}]   ;;  %s2446_s13 = inlined_call_operand.hbm [shape: f32[2,8,32], index: 13, kind: output, shape index: {}]  }
   0x1   :  { %2462 = sst [smem:[#allocation19_spill]] %s2433_s0 }
   0x2   :  { %2463 = sst [smem:[#allocation20_spill]] %s2434_s1 }
   0x3   :  { %2464 = sst [smem:[#allocation21_spill]] %s2436_s3 }
   0x4   :  { %2465 = sst [smem:[#allocation22_spill]] %s2439_s6 }
   0x5   :  { %2466 = sst [smem:[#allocation23_spill]] %s2440_s7 }
   0x6   :  { %2467 = sst [smem:[#allocation24_spill]] %s2445_s12 }
   0x7   :  { %2468 = sst [smem:[#allocation25_spill]] %s2446_s13 }
   0x8   :  { %18 = vsyncpa [#allocation4], 0 }
   0x9   :  { %20 = vsyncpa [#allocation4 + $0x1], 0  ;;  %s2106_s25 = smov 0   ;;  %s2108_s26 = smov 0  }
   0xa   :  { %s2110_s27 = smov 0   ;;  %s2112_s28 = smov 0  }
   0xb   :  { %s2114_s29 = smov 0   ;;  %s2116_s30 = smov 0  }
   0xc   :  { %s2118_s14 = smov 0   ;;  %s2120_s15 = smov 0  }
   0xd LB: > { %2469 = sst [smem:[#allocation6_spill]] %s1989_s25  ;;  %s1649_s16 = sadd.s32 4294967295, %s2017_s15   ;;  %s2017_s15 = sphi %s2120_s15, %s26_s15   ;;  %s2013_s14 = sphi %s2118_s14, %s2513_s14   ;;  %s2009_s30 = sphi %s2116_s30, %s2512_s30   ;;  %s2005_s29 = sphi %s2114_s29, %s2511_s29   ;;  %s2001_s28 = sphi %s2112_s28, %s2510_s28   ;;  %s1997_s27 = sphi %s2110_s27, %s2509_s27   ;;  %s1993_s26 = sphi %s2108_s26, %s2508_s26   ;;  %s1989_s25 = sphi %s2106_s25, %s2507_s25  }
   0xe   : > { %2470 = sst [smem:[#allocation7_spill]] %s1993_s26  ;;  %s1650_s17 = sadd.s32 4294967294, %s2017_s15  }
   0xf   : > { %2471 = sst [smem:[#allocation8_spill]] %s1997_s27  ;;  %s35_s18 = sadd.s32 1, %s2009_s30 }
  0x10   : > { %2472 = sst [smem:[#allocation9_spill]] %s2001_s28  ;;  %p36_p0 = scmp.ge.s32.totalorder %s35_s18, 2 }
  0x11   : > { %2473 = sst [smem:[#allocation10_spill]] %s2005_s29  ;;  %s38_s19 = sadd.s32 1, %s2013_s14 }
  0x12   : > { %2474 = sst [smem:[#allocation11_spill]] %s2009_s30  ;;  %p393_p1 = scmp.ne.s32.totalorder %s1997_s27, %s1993_s26 }
  0x13   : > { %2475 = sst [smem:[#allocation12_spill]] %s2013_s14  ;;  %p394_p2 = scmp.eq.s32.totalorder %s1649_s16, 3 }
  0x14   : > { %2476 = sst [smem:[#allocation13_spill]] %s2017_s15  ;;  %s2515_s18 = smov (%p36_p0, %s35_s18), 0 }
  0x15   : > { %2477 = sst [smem:[#allocation14_spill]] %s2515_s18  ;;  %s2517_s19 = smov (!%p36_p0, %s38_s19), %s2013_s14 }
  0x16   : > { %p2155_p3 = por %p394_p2, %p393_p1  ;;  %p399_p4 = scmp.ne.s32.totalorder %s1993_s26, %s1989_s25 }
  0x17   : > { %p40_p5 = scmp.ge.s32.totalorder %s2517_s19, 2  ;;  %p400_p6 = scmp.eq.s32.totalorder %s1650_s17, 3 }
  0x18   : > { %s2478_s20 = scalar_select %p2155_p3, 1, 0 }
  0x19   : > { %p1653_p7 = scmp.ge.s32.totalorder %s2017_s15, 1  ;;  %p505_p8 = scmp.lt.s32.totalorder %s2017_s15, 5 }
  0x1a   : > { %2479 = sst [smem:[#allocation15_spill]] %s2478_s20  ;;  %s2519_s19 = smov (%p40_p5, %s2517_s19), 0 }
  0x1b   : > { %2480 = sst [smem:[#allocation16_spill]] %s2519_s19  ;;  %p2165_p9 = por %p400_p6, %p399_p4 }
  0x1c   : > { %p506_p10 = pnand %p1653_p7, %p505_p8  ;;  %s380_s22 = ssub.s32 %s2013_s14, %s2519_s19 }
  0x1d   : > { %s2481_s21 = scalar_select %p2165_p9, 1, 0 }
  0x1e   : > { %s383_s23 = sadd.s32 1, %s1997_s27  ;;  %p381_p11 = scmp.eq.s32.totalorder %s380_s22, 0 }
  0x1f   : > { %2482 = sst [smem:[#allocation17_spill]] %s2481_s21  ;;  %509 = sbr.rel (%p506_p10) target bundleno = 2505 (0x9c9), region = 72 }
  0x20   : > { %s2173_s24 = scalar_select %p381_p11, %s1997_s27, %s383_s23  }
  0x21   : > { %s2449_s16 = sand.u32 (!%p506_p10), 1, %s1993_s26   ;;  %p592_p12 = scmp.lt.s32.totalorder (!%p506_p10), %s2005_s29, 1 }
  0x22   : > { %2483 = sst [smem:[#allocation18_spill]] %s2173_s24  ;;  %s2179_s17 = sshll.u32 (!%p506_p10), %s2449_s16, 3 }
  0x23   : > { %p596_p13 = scmp.lt.s32.totalorder (!%p506_p10), %s2001_s28, 1  ;;  %s2484_s0 = sld [smem:[#allocation19_spill]] (!%p506_p10) }
  0x24   : > { %s593_s18 = scalar_select %p592_p12, %s2005_s29, 1 }
  0x25   : > { %s2184_s30 = scalar_select %p596_p13, %s2001_s28, 1 }
  0x26   : > { %s1655_s22 = sshll.u32 %s593_s18, 3  ;;  %s2485_s1 = sld [smem:[#allocation20_spill]] }
  0x27   : > { %s1698_s14 = sshll.u32 %s2184_s30, 4  ;;  %s2486_s3 = sld [smem:[#allocation21_spill]] }
  0x28   : > { %s2488_s7 = sld [smem:[#allocation23_spill]]  ;;  %s625_s13 = scalar_lea.vmem %s2441_s8, %s2184_s30 }
  0x29   : > { %s595_s16 = scalar_lea.vmem %s2484_s0, %s1655_s22  ;;  %s2226_s18 = scalar_lea.vmem %s2442_s9, %s1698_s14 }
  0x2a   : > { %s633_s23 = scalar_lea.vmem %s2443_s10, %s2184_s30  ;;  %s636_s24 = scalar_lea.vmem %s2444_s11, %s2184_s30 }
  0x2b   : > { %s2489_s12 = sld [smem:[#allocation24_spill]]  ;;  %s591_s6 = scalar_lea.vmem [#allocation3], %s2179_s17 }
  0x2c   : > { %s600_s21 = scalar_lea.vmem %s2485_s1, %s1698_s14  ;;  %s2490_s26 = sld [smem:[#allocation9_spill]] }
  0x2d   : > { %s2200_s29 = scalar_lea.vmem %s2486_s3, %s1698_s14 }
  0x2e   : > { %s2217_s15 = scalar_lea.vmem %s2488_s7, %s1698_s14 }
  0x31   : > { %s639_s7 = scalar_lea.vmem %s2489_s12, %s2184_s30 }
  0x32   : > { %p1664_p0 = scmp.ne.s32.totalorder %s2490_s26, 0 }
  0x34   : > { %644 = sbr.rel (%p1664_p0) target bundleno = 59 (0x3b), region = 76 }
  0x39   : > { %v645_v0 = vld [vmem:[%s595_s16] sm:$0xff]  ;;  %vm646_vm0 = vcmask 261120  }
  0x3a   : > { %647 = vst.msk [vmem:[#allocation2] sm:$0xff] %vm646_vm0, %v645_v0 }
  0x3b PF: > { %v1897_v1 = vld [vmem:[%s600_s21 + $0x8] sm:$0xff]   ;;  %v2019_v2 = vmov 0.0   ;;  %v1898_v3 = vld [vmem:[%s600_s21] sm:$0xff]   ;;  %vm2020_vm1 = vmmov 0   ;;  %vm673_vm2 = vcmask 261120   ;;  %s2491_s14 = scalar_lea.vmem %s2435_s2, %s2184_s30  ;;  %s2021_s21 = smov 120  }
  0x3c   : > { %1730 = vmatprep.subr.bf16.mxu0 %v2019_v2  ;;  %1738 = vmatprep.subr.bf16.mxu1 %v2019_v2  ;;  %v1665_v6 = vld [vmem:[%s2491_s14] ss:$0 sm:$0xff]  ;;  %s2022_s16 = smov 96   ;;  %s2023_s20 = smov 80   ;;  %vm721_vm3 = vcmask 64512   ;;  %vm785_vm4 = vcmask 1043456  }
  0x3d   : > { %1731 = vmatpush3.bf16.msra.mxu0 %v1897_v1  ;;  %1734 = vmatprep.mubr.msk.bf16.mxu0 %vm2020_vm1, %v2019_v2  ;;  %s2024_s28 = smov 88   ;;  %s2025_s19 = smov 72   ;;  %vm1172_vm5 = vcmask 130048   ;;  %vm1174_vm6 = vcmask 195584  }
  0x3e   : > { %1732 = vmatprep.subr.bf16.mxu0 %v2019_v2  ;;  %1740 = vmatprep.mubr.msk.bf16.mxu1 %vm2020_vm1, %v2019_v2  ;;  %s2026_s22 = smov 112   ;;  %s2027_s0 = smov 104  }
  0x3f   : > { %s2028_s27 = smov 56   ;;  %s2029_s1 = smov 64  }
  0x40   : > { %s2030_s25 = smov 40   ;;  %s2031_s26 = smov 48  }
  0x41   : > { %v2246_v4 = vld [vmem:[#allocation2] sm:$0xff]  ;;  %1733 = vmatpush3.bf16.msra.mxu0 %v1898_v3  ;;  %s2032_s3 = smov 8   ;;  %s2033_s12 = smov 16  }
  0x42   : > { %v649_v5 = vpack.c.bf16 %v2246_v4, %v2246_v4  ;;  %1744 = vmatprep.subr.bf16.mxu0 %v2019_v2  ;;  %s2034_s14 = smov 24  }
  0x44   : > { %1735 = vmatmul.mubr.msk.bf16.vlgmr.msra.gmra.mxu0 %vm673_vm2, %v649_v5 }
  0x45   : > { %1746 = vmatprep.mubr.msk.bf16.mxu0 %vm2020_vm1, %v2019_v2 }
 0x104   : > { %v711_v7 = vpop.f32.mrf.mxu0 }
 0x105   : > { %v712_v8 = vadd.f32 %v1665_v6, %v711_v7 }
 0x106   : > { %v1736_v9 = vpop.f32.mrf.mxu0 }
 0x107   : > { %v2262_v10 = vpack.c.bf16 %v712_v8, %v712_v8 }
 0x108   : > { %v714_v11 = vpop.f32.mrf.mxu0 }
 0x109   : > { %829 = vrot.lane.b32.xlu1 %v2262_v10, %s2021_s21  ;;  %719 = vrot.lane.b32.xlu0 %v2262_v10, %s2022_s16  ;;  %s2492_s16 = scalar_lea.vmem %s2437_s4, %s2184_s30 }
 0x10a   : > { %v1737_v12 = vpop.f32.mrf.mxu0 }
 0x10d   : > { %941 = vrot.lane.b32.xlu1 %v2262_v10, %s2023_s20  ;;  %831 = vrot.lane.b32.xlu0 %v2262_v10, %s2024_s28 }
 0x111   : > { %1051 = vrot.lane.b32.xlu1 %v2262_v10, %s2025_s19  ;;  %939 = vrot.lane.b32.xlu0 %v2262_v10, %s2026_s22  ;;  %s2493_s19 = scalar_lea.vmem %s2438_s5, %s2184_s30 }
 0x115   : > { %1049 = vrot.lane.b32.xlu0 %v2262_v10, %s2027_s0 }
 0x17b   : > { %v720_v13 = vpop.permute.xlu0 %719  ;;  %v830_v16 = vpop.permute.xlu1 %829 }
 0x17c   : > { %v726_v14 = vsel %vm721_vm3, %v720_v13, 0 }
 0x17d   : > { %1739 = vmatpush3.bf16.xpose.msra.mxu1 %v726_v14 }
 0x17e   : > { %1750 = vmatprep.subr.bf16.mxu1 %v2019_v2 }
 0x17f   : > { %v832_v15 = vpop.permute.xlu0 %831  ;;  %v942_v18 = vpop.permute.xlu1 %941 }
 0x180   : > { %v837_v17 = vsel %vm721_vm3, %v832_v15, 0  ;;  %v947_v19 = vsel %vm721_vm3, %v942_v18, 0 }
 0x183   : > { %v1052_v20 = vpop.permute.xlu1 %1051  ;;  %v940_v21 = vpop.permute.xlu0 %939 }
 0x184   : > { %1741 = vmatmul.mubr.msk.bf16.vlgmr.msra.gmra.mxu1 %vm721_vm3, %v2262_v10  ;;  %v1057_v22 = vsel %vm721_vm3, %v1052_v20, 0 }
 0x185   : > { %1751 = vmatpush3.bf16.xpose.msra.mxu1 %v837_v17  ;;  %1752 = vmatprep.mubr.msk.bf16.mxu1 %vm2020_vm1, %v2019_v2 }
 0x186   : > { %1762 = vmatprep.subr.bf16.mxu1 %v2019_v2 }
 0x187   : > { %v1050_v23 = vpop.permute.xlu0 %1049 }
 0x18c   : > { %1753 = vmatmul.mubr.msk.bf16.vlgmr.msra.gmra.mxu1 %vm721_vm3, %v830_v16 }
 0x18d   : > { %1763 = vmatpush3.bf16.xpose.msra.mxu1 %v947_v19  ;;  %1764 = vmatprep.mubr.msk.bf16.mxu1 %vm2020_vm1, %v2019_v2 }
 0x18e   : > { %1774 = vmatprep.subr.bf16.mxu1 %v2019_v2 }
 0x194   : > { %1765 = vmatmul.mubr.msk.bf16.vlgmr.msra.gmra.mxu1 %vm721_vm3, %v940_v21 }
 0x195   : > { %1775 = vmatpush3.bf16.xpose.msra.mxu1 %v1057_v22  ;;  %1776 = vmatprep.mubr.msk.bf16.mxu1 %vm2020_vm1, %v2019_v2 }
 0x196   : > { %1786 = vmatprep.subr.bf16.mxu1 %v2019_v2 }
 0x19c   : > { %1777 = vmatmul.mubr.msk.bf16.vlgmr.msra.gmra.mxu1 %vm721_vm3, %v1050_v23 }
 0x19d   : > { %1790 = vmatprep.mubr.msk.bf16.mxu1 %vm2020_vm1, %v2019_v2 }
 0x244   : > { %v762_v24 = vpop.f32.mrf.mxu1 }
 0x245   : > { %v768_v25 = vsel %vm721_vm3, %v762_v24, -inf }
 0x246   : > { %769 = vmax.xlane.f32.xlu1 %v768_v25  ;;  %v1742_v26 = vpop.f32.mrf.mxu1 }
 0x248   : > { %v765_v27 = vpop.f32.mrf.mxu1 }
 0x24a   : > { %v1743_v28 = vpop.f32.mrf.mxu1 }
 0x24c   : > { %v873_v29 = vpop.f32.mrf.mxu1 }
 0x24d   : > { %v879_v30 = vsel %vm721_vm3, %v873_v29, -inf }
 0x24e   : > { %880 = vmax.xlane.f32.xlu0 %v879_v30  ;;  %v1754_v31 = vpop.f32.mrf.mxu1 }
 0x250   : > { %v876_v32 = vpop.f32.mrf.mxu1 }
 0x252   : > { %v1755_v33 = vpop.f32.mrf.mxu1 }
 0x254   : > { %v983_v34 = vpop.f32.mrf.mxu1 }
 0x255   : > { %v989_v35 = vsel %vm721_vm3, %v983_v34, -inf }
 0x256   : > { %990 = vmax.xlane.f32.xlu0 %v989_v35  ;;  %v1766_v36 = vpop.f32.mrf.mxu1  ;;  %v1900_v35 = vld [vmem:[%s2200_s29] sm:$0xff]  }
 0x258   : > { %v986_v37 = vpop.f32.mrf.mxu1 }
 0x25a   : > { %v1767_v38 = vpop.f32.mrf.mxu1 }
 0x25c   : > { %v1093_v39 = vpop.f32.mrf.mxu1 }
 0x25d   : > { %v1099_v40 = vsel %vm721_vm3, %v1093_v39, -inf }
 0x25e   : > { %1100 = vmax.xlane.f32.xlu1 %v1099_v40  ;;  %v1778_v41 = vpop.f32.mrf.mxu1 }
 0x260   : > { %v1096_v42 = vpop.f32.mrf.mxu1 }
 0x262   : > { %v1779_v43 = vpop.f32.mrf.mxu1 }
 0x2cf   : > { %v770_v44 = vpop.xlane.xlu1 %769 }
 0x2d0   : > { %v771_v45 = vsub.f32 %v762_v24, %v770_v44 }
 0x2d2   : > { %v772_v46 = vmul.f32 1.442695, %v771_v45 }
 0x2d4   : > { %1905 = vpow2.f32 %v772_v46 }
 0x2d7   : > { %v881_v47 = vpop.xlane.xlu0 %880 }
 0x2d8   : > { %v882_v48 = vsub.f32 %v873_v29, %v881_v47 }
 0x2da   : > { %v883_v49 = vmul.f32 1.442695, %v882_v48 }
 0x2dc   : > { %1907 = vpow2.f32 %v883_v49 }
 0x2df   : > { %v991_v50 = vpop.xlane.xlu0 %990 }
 0x2e0   : > { %v992_v51 = vsub.f32 %v983_v34, %v991_v50  ;;  %v1899_v34 = vld [vmem:[%s2200_s29 + $0x8] sm:$0xff]   ;;  %s2497_s29 = sld [smem:[#allocation9_spill]] }
 0x2e1   : > { %v1906_v52 = vpop.eup %1905  ;;  %1787 = vmatpush3.bf16.msra.mxu1 %v1899_v34 }
 0x2e2   : > { %v993_v53 = vmul.f32 1.442695, %v992_v51  ;;  %v774_v54 = vsel %vm721_vm3, %v1906_v52, 0.0  ;;  %1788 = vmatprep.subr.bf16.mxu1 %v2019_v2  ;;  %v1677_v51 = vld [vmem:[%s2492_s16] ss:$0 sm:$0xff] }
 0x2e3   : > { %775 = vadd.xlane.f32.xlu0 %v774_v54 }
 0x2e4   : > { %1909 = vpow2.f32 %v993_v53 }
 0x2e5   : > { %1789 = vmatpush3.bf16.msra.mxu1 %v1900_v35 }
 0x2e6   : > { %1802 = vmatprep.subr.bf16.mxu1 %v2019_v2  ;;  %p1693_p1 = scmp.ne.s32.totalorder %s2497_s29, 1 }
 0x2e7   : > { %v1101_v59 = vpop.xlane.xlu1 %1100 }
 0x2e8   : > { %v1102_v60 = vsub.f32 %v1093_v39, %v1101_v59 }
 0x2e9   : > { %v1908_v55 = vpop.eup %1907 }
 0x2ea   : > { %v885_v56 = vsel %vm721_vm3, %v1908_v55, 0.0  ;;  %v1103_v61 = vmul.f32 1.442695, %v1102_v60 }
 0x2eb   : > { %886 = vadd.xlane.f32.xlu1 %v885_v56 }
 0x2ec   : > { %1911 = vpow2.f32 %v1103_v61 }
 0x2f1   : > { %v1910_v57 = vpop.eup %1909 }
 0x2f2   : > { %v995_v58 = vsel %vm721_vm3, %v1910_v57, 0.0 }
 0x2f3   : > { %996 = vadd.xlane.f32.xlu0 %v995_v58 }
 0x2f9   : > { %v1912_v62 = vpop.eup %1911 }
 0x2fa   : > { %v1105_v63 = vsel %vm721_vm3, %v1912_v62, 0.0 }
 0x2fc   : > { %891 = vrot.lane.b32.xlu1 %v2262_v10, %s2028_s27 }
 0x309   : > { %780 = vrot.lane.b32.xlu0 %v2262_v10, %s2029_s1 }
 0x30d   : > { %1111 = vrot.lane.b32.xlu0 %v2262_v10, %s2030_s25 }
 0x320   : > { %1106 = vadd.xlane.f32.xlu1 %v1105_v63  ;;  %v1901_v63 = vld [vmem:[%s2217_s15 + $0x8] sm:$0xff]  }
 0x331   : > { %1001 = vrot.lane.b32.xlu1 %v2262_v10, %s2031_s26 }
 0x36c   : > { %v776_v0 = vpop.xlane.xlu0 %775 }
 0x36d   : > { %1913 = vrcp.f32 %v776_v0  ;;  %v1902_v0 = vld [vmem:[%s2217_s15] sm:$0xff]   ;;  %s2494_s15 = sld [smem:[#allocation22_spill]] }
 0x373   : > { %s2495_s27 = scalar_lea.vmem %s2494_s15, %s2184_s30 }
 0x374   : > { %v887_v1 = vpop.xlane.xlu1 %886 }
 0x375   : > { %1915 = vrcp.f32 %v887_v1 }
 0x378   : > { %v892_v9 = vpop.permute.xlu1 %891 }
 0x379   : > { %v897_v13 = vsel %vm785_vm4, %v892_v9, 0  ;;  %v1682_v9 = vld [vmem:[%s2495_s27] ss:$0 sm:$0xff] }
 0x37a   : > { %v1914_v3 = vpop.eup %1913 }
 0x37b   : > { %v778_v6 = vmul.f32 %v1914_v3, %v1906_v52 }
 0x37c   : > { %v997_v5 = vpop.xlane.xlu0 %996 }
 0x37d   : > { %v779_v11 = vpack.c.bf16 %v778_v6, %v778_v6  ;;  %1917 = vrcp.f32 %v997_v5 }
 0x380   : > { %v781_v7 = vpop.permute.xlu0 %780 }
 0x381   : > { %v787_v8 = vsel %vm785_vm4, %v781_v7, 0  ;;  %v1681_v7 = vld [vmem:[%s2493_s19] ss:$0 sm:$0xff] }
 0x382   : > { %1745 = vmatpush3.bf16.msra.mxu0 %v787_v8  ;;  %v1916_v12 = vpop.eup %1915 }
 0x383   : > { %1756 = vmatprep.subr.bf16.mxu0 %v2019_v2  ;;  %v889_v10 = vmul.f32 %v1916_v12, %v1908_v55 }
 0x384   : > { %v1112_v20 = vpop.permute.xlu0 %1111 }
 0x385   : > { %1747 = vmatmul.mubr.msk.bf16.vlgmr.msra.gmra.mxu0 %vm721_vm3, %v779_v11  ;;  %v890_v14 = vpack.c.bf16 %v889_v10, %v889_v10  ;;  %v1117_v22 = vsel %vm785_vm4, %v1112_v20, 0 }
 0x386   : > { %1757 = vmatpush3.bf16.msra.mxu0 %v897_v13  ;;  %1758 = vmatprep.mubr.msk.bf16.mxu0 %vm2020_vm1, %v2019_v2 }
 0x387   : > { %1768 = vmatprep.subr.bf16.mxu0 %v2019_v2 }
 0x38a   : > { %v1918_v15 = vpop.eup %1917 }
 0x38b   : > { %v999_v17 = vmul.f32 %v1918_v15, %v1910_v57  ;;  %v1904_v15 = vld [vmem:[%s2226_s18] sm:$0xff]  }
 0x38d   : > { %1759 = vmatmul.mubr.msk.bf16.vlgmr.msra.gmra.mxu0 %vm721_vm3, %v890_v14  ;;  %v1000_v21 = vpack.c.bf16 %v999_v17, %v999_v17  ;;  %v1903_v14 = vld [vmem:[%s2226_s18 + $0x8] sm:$0xff]  }
 0x38e   : > { %1770 = vmatprep.mubr.msk.bf16.mxu0 %vm2020_vm1, %v2019_v2 }
 0x3a9   : > { %v1107_v16 = vpop.xlane.xlu1 %1106 }
 0x3aa   : > { %1919 = vrcp.f32 %v1107_v16  ;;  %v1683_v16 = vld [vmem:[%s625_s13] ss:$0 sm:$0xff] }
 0x3ad   : > { %v1002_v18 = vpop.permute.xlu1 %1001 }
 0x3ae   : > { %v1007_v19 = vsel %vm785_vm4, %v1002_v18, 0 }
 0x3af   : > { %1769 = vmatpush3.bf16.msra.mxu0 %v1007_v19 }
 0x3b0   : > { %1780 = vmatprep.subr.bf16.mxu0 %v2019_v2 }
 0x3b2   : > { %1771 = vmatmul.mubr.msk.bf16.vlgmr.msra.gmra.mxu0 %vm721_vm3, %v1000_v21 }
 0x3b3   : > { %1781 = vmatpush3.bf16.msra.mxu0 %v1117_v22  ;;  %1782 = vmatprep.mubr.msk.bf16.mxu0 %vm2020_vm1, %v2019_v2 }
 0x3b4   : > { %1794 = vmatprep.subr.bf16.mxu0 %v2019_v2 }
 0x3b7   : > { %v1920_v23 = vpop.eup %1919 }
 0x3b8   : > { %v1109_v24 = vmul.f32 %v1920_v23, %v1912_v62 }
 0x3ba   : > { %v1110_v25 = vpack.c.bf16 %v1109_v24, %v1109_v24 }
 0x3bc   : > { %1783 = vmatmul.mubr.msk.bf16.vlgmr.msra.gmra.mxu0 %vm721_vm3, %v1110_v25 }
 0x3bd   : > { %1798 = vmatprep.mubr.msk.bf16.mxu0 %vm2020_vm1, %v2019_v2  ;;  %1795 = vmatpush3.bf16.msra.mxu0 %v1901_v63 }
 0x3be   : > { %1796 = vmatprep.subr.bf16.mxu0 %v2019_v2 }
 0x3c1   : > { %1797 = vmatpush3.bf16.msra.mxu0 %v1902_v0 }
 0x445   : > { %v823_v26 = vpop.f32.mrf.mxu0 }
 0x447   : > { %v1748_v27 = vpop.f32.mrf.mxu0 }
 0x449   : > { %v826_v28 = vpop.f32.mrf.mxu0 }
 0x44b   : > { %v1749_v29 = vpop.f32.mrf.mxu0 }
 0x44d   : > { %v933_v30 = vpop.f32.mrf.mxu0 }
 0x44e   : > { %1160 = vrot.lane.b32.xlu1 %v933_v30, %s2032_s3 }
 0x44f   : > { %v1760_v31 = vpop.f32.mrf.mxu0 }
 0x451   : > { %v936_v32 = vpop.f32.mrf.mxu0 }
 0x453   : > { %v1761_v33 = vpop.f32.mrf.mxu0 }
 0x472   : > { %v1043_v36 = vpop.f32.mrf.mxu0 }
 0x473   : > { %1164 = vrot.lane.b32.xlu0 %v1043_v36, %s2033_s12 }
 0x474   : > { %v1772_v37 = vpop.f32.mrf.mxu0 }
 0x476   : > { %v1046_v38 = vpop.f32.mrf.mxu0 }
 0x477   : > { %v1691_v38 = vld [vmem:[%s636_s24] ss:$0 sm:$0xff] }
 0x478   : > { %v1773_v39 = vpop.f32.mrf.mxu0 }
 0x47c   : > { %v1153_v40 = vpop.f32.mrf.mxu0 }
 0x47d   : > { %1168 = vrot.lane.b32.xlu1 %v1153_v40, %s2034_s14  ;;  %v1692_v40 = vld [vmem:[%s639_s7] ss:$0 sm:$0xff] }
 0x47e   : > { %v1784_v41 = vpop.f32.mrf.mxu0 }
 0x480   : > { %v1156_v42 = vpop.f32.mrf.mxu0 }
 0x482   : > { %v1785_v43 = vpop.f32.mrf.mxu0 }
 0x4c0   : > { %v1161_v44 = vpop.permute.xlu1 %1160 }
 0x4c1   : > { %v1171_v46 = vsel %vm721_vm3, %v823_v26, %v1161_v44 }
 0x4e5   : > { %v1165_v45 = vpop.permute.xlu0 %1164 }
 0x4e6   : > { %v1173_v47 = vsel %vm1172_vm5, %v1171_v46, %v1165_v45 }
 0x4ef   : > { %v1169_v48 = vpop.permute.xlu1 %1168 }
 0x4f0   : > { %v1175_v49 = vsel %vm1174_vm6, %v1173_v47, %v1169_v48 }
 0x4f1   : > { %v1176_v50 = vpack.c.bf16 %v1175_v49, %v1175_v49 }
 0x4f3   : > { %1791 = vmatmul.mubr.msk.bf16.vlgmr.msra.gmra.mxu1 %vm673_vm2, %v1176_v50 }
 0x4f4   : > { %1806 = vmatprep.mubr.msk.bf16.mxu1 %vm2020_vm1, %v2019_v2  ;;  %1803 = vmatpush3.bf16.msra.mxu1 %v1903_v14 }
 0x4f5   : > { %1804 = vmatprep.subr.bf16.mxu1 %v2019_v2  ;;  %v1687_v2 = vld [vmem:[%s633_s23] ss:$0 sm:$0xff] }
 0x4f8   : > { %1805 = vmatpush3.bf16.msra.mxu1 %v1904_v15 }
 0x5b3   : > { %v1237_v52 = vpop.f32.mrf.mxu1 }
 0x5b4   : > { %v1238_v53 = vadd.f32 %v1677_v51, %v1237_v52 }
 0x5b5   : > { %v1792_v54 = vpop.f32.mrf.mxu1 }
 0x5b6   : > { %v1245_v55 = vsel %vm673_vm2, %v1238_v53, 0.0 }
 0x5b7   : > { %1246 = vadd.xlane.f32.xlu0 %v1245_v55  ;;  %v1240_v56 = vpop.f32.mrf.mxu1 }
 0x5b9   : > { %v1793_v57 = vpop.f32.mrf.mxu1 }
 0x640   : > { %v1247_v58 = vpop.xlane.xlu0 %1246 }
 0x641   : > { %v1249_v59 = vmul.f32 0.03125, %v1247_v58 }
 0x643   : > { %v1250_v60 = vsub.f32 %v1238_v53, %v1249_v59 }
 0x645   : > { %v1251_v61 = vmul.f32 %v1250_v60, %v1250_v60 }
 0x647   : > { %v1252_v62 = vsel %vm673_vm2, %v1251_v61, 0.0 }
 0x648   : > { %1253 = vadd.xlane.f32.xlu1 %v1252_v62 }
 0x6d1   : > { %v1254_v1 = vpop.xlane.xlu1 %1253 }
 0x6d2   : > { %v1255_v3 = vmul.f32 0.03125, %v1254_v1 }
 0x6d4   : > { %v1256_v5 = vadd.f32 1e-05, %v1255_v3 }
 0x6d6   : > { %1921 = vrsqrt.f32 %v1256_v5 }
 0x6e3   : > { %v1922_v6 = vpop.eup %1921 }
 0x6e4   : > { %v1258_v8 = vmul.f32 %v1922_v6, %v1250_v60 }
 0x6e6   : > { %v1265_v11 = vmul.f32 %v1681_v7, %v1258_v8 }
 0x6e8   : > { %v1272_v12 = vadd.f32 %v1682_v9, %v1265_v11 }
 0x6ea   : > { %v1273_v13 = vadd.f32 %v1272_v12, %v2246_v4 }
 0x6ec   : > { %v1274_v10 = vpack.c.bf16 %v1273_v13, %v1273_v13 }
 0x6ee   : > { %1799 = vmatmul.mubr.msk.bf16.vlgmr.msra.gmra.mxu0 %vm673_vm2, %v1274_v10 }
 0x7ae   : > { %v1335_v17 = vpop.f32.mrf.mxu0 }
 0x7af   : > { %v1336_v18 = vadd.f32 %v1683_v16, %v1335_v17 }
 0x7b0   : > { %v1800_v19 = vpop.f32.mrf.mxu0 }
 0x7b1   : > { %v1341_v20 = vmax.f32 %v1336_v18, 0.0 }
 0x7b2   : > { %v1338_v4 = vpop.f32.mrf.mxu0 }
 0x7b3   : > { %v1342_v21 = vpack.c.bf16 %v1341_v20, %v1341_v20 }
 0x7b4   : > { %v1801_v22 = vpop.f32.mrf.mxu0 }
 0x7b5   : > { %1807 = vmatmul.mubr.msk.bf16.vlgmr.msra.gmra.mxu1 %vm673_vm2, %v1342_v21 }
 0x875   : > { %v1403_v23 = vpop.f32.mrf.mxu1 }
 0x876   : > { %v1404_v24 = vadd.f32 %v1687_v2, %v1403_v23 }
 0x877   : > { %v1808_v25 = vpop.f32.mrf.mxu1 }
 0x878   : > { %v1411_v26 = vsel %vm673_vm2, %v1404_v24, 0.0 }
 0x879   : > { %1412 = vadd.xlane.f32.xlu0 %v1411_v26  ;;  %v1406_v27 = vpop.f32.mrf.mxu1 }
 0x87b   : > { %v1809_v28 = vpop.f32.mrf.mxu1 }
 0x902   : > { %v1413_v29 = vpop.xlane.xlu0 %1412 }
 0x903   : > { %v1414_v30 = vmul.f32 0.03125, %v1413_v29 }
 0x905   : > { %v1415_v31 = vsub.f32 %v1404_v24, %v1414_v30 }
 0x907   : > { %v1416_v32 = vmul.f32 %v1415_v31, %v1415_v31 }
 0x909   : > { %v1417_v33 = vsel %vm673_vm2, %v1416_v32, 0.0 }
 0x90a   : > { %1418 = vadd.xlane.f32.xlu0 %v1417_v33 }
 0x993   : > { %v1419_v34 = vpop.xlane.xlu0 %1418 }
 0x994   : > { %v1420_v35 = vmul.f32 0.03125, %v1419_v34 }
 0x996   : > { %v1421_v36 = vadd.f32 1e-05, %v1420_v35 }
 0x998   : > { %1923 = vrsqrt.f32 %v1421_v36 }
 0x9a5   : > { %v1924_v37 = vpop.eup %1923 }
 0x9a6   : > { %v1423_v39 = vmul.f32 %v1924_v37, %v1415_v31 }
 0x9a8   : > { %v1430_v41 = vmul.f32 %v1691_v38, %v1423_v39 }
 0x9aa   : > { %v1437_v42 = vadd.f32 %v1692_v40, %v1430_v41  ;;  %1443 = sbr.rel (%p1693_p1) target bundleno = 2480 (0x9b0), region = 80 }
 0x9ac   : > { %v1438_v43 = vadd.f32 %v1437_v42, %v1273_v13 }
 0x9ae   : > { %1439 = vst.msk [vmem:[#allocation2] sm:$0xff] %vm673_vm2, %v1438_v43 }
 0x9af   : > { %1444 = vst.msk [vmem:[%s591_s6] sm:$0xff] %vm673_vm2, %v1438_v43 }
 0x9b0 PF: > { %s2498_s24 = sld [smem:[#allocation10_spill]]  ;;  %s1459_s0 = sshll.u32 %s591_s6, 4  ;;  %s1460_s0 = int_to_ptr.vmem [resolvable:$true] %s1459_s0 }
 0x9b1   : > { %s2499_s21 = sld [smem:[#allocation7_spill]]  ;;  %s1925_s1 = scalar_lea.vmem %s1460_s0, 128 }
 0x9b2   : > { %s2501_s28 = sld [smem:[#allocation25_spill]]  ;;  %p1926_p2 = scmp.ne.s32.totalorder %s1460_s0, %s1925_s1 }
 0x9b3   : > { %s2035_s25 = smov [#allocation3]  }
 0x9b4   : > { %p1927_p4 = pnand %p1926_p2, %p2155_p3  ;;  %s1929_s26 = sshll.u32 %s2035_s25, 4  ;;  %s1930_s26 = int_to_ptr.vmem [resolvable:$false] %s1929_s26 }
 0x9b5   : > { %s1931_s3 = scalar_lea.vmem %s1930_s26, 256  ;;  %p1932_p6 = scmp.lt.s32.totalorder %s1460_s0, %s1930_s26 }
 0x9b6   : > { %s1695_s20 = sshll.u32 %s2498_s24, 7  ;;  %p1928_p5 = pneg %p1927_p4 }
 0x9b7   : > { %s2503_s15 = sand.u32 1, %s2499_s21   ;;  %p1933_p7 = scmp.lt.s32.totalorder %s1931_s3, %s1925_s1 }
 0x9b8   : > { %s2502_s19 = smov %s2501_s28  ;;  %s1457_s22 = scalar_lea.hbm %s2501_s28, %s1695_s20 }
 0x9b9   : > { %s1446_s27 = scalar_lea.sflag [#allocation4], %s2503_s15  ;;  %p1934_p8 = por %p1933_p7, %p1932_p6 }
 0x9bb   : > { %p1935_p10 = pnand %p1934_p8, %p1928_p5 }
 0x9bd   : > { %1938 = shalt.err (!%p1935_p10)
}
 0x9be   : > { %s1939_s13 = scalar_lea.hbm %s1457_s22, 128  ;;  %s1943_s23 = scalar_lea.hbm %s2502_s19, 256 }
 0x9bf   : > { %p1940_p11 = scmp.ne.s32.totalorder %s1457_s22, %s1939_s13  ;;  %p1944_p0 = scmp.lt.s32.totalorder %s1457_s22, %s2502_s19 }
 0x9c0   : > { %p1945_p1 = scmp.lt.s32.totalorder %s1943_s23, %s1939_s13 }
 0x9c1   : > { %p1941_p12 = pnand %p1940_p11, %p2155_p3 }
 0x9c2   : > { %p1946_p2 = por %p1945_p1, %p1944_p0 }
 0x9c3   : > { %p1942_p13 = pneg %p1941_p12 }
 0x9c5   : > { %p1947_p4 = pnand %p1946_p2, %p1942_p13 }
 0x9c7   : > { %1950 = shalt.err (!%p1947_p4)
}
 0x9c8   : > { %1810 = dma.vmem_to_hbm [thread:$0]  (%p2155_p3), %s1460_s0, 128, %s1457_s22, %s1446_s27  }
 0x9c9 PF: > { %s2504_s14 = sld [smem:[#allocation13_spill]] }
 0x9ca   : > { %s2505_s29 = sld [smem:[#allocation6_spill]] }
 0x9cf   : > { %p1816_p5 = scmp.ge.s32.totalorder %s2504_s14, 2 }
 0x9d0   : > { %s1471_s21 = sand.u32 1, %s2505_s29  }
 0x9d1   : > { %p1813_p6 = pnand %p1816_p5, %p2165_p9  ;;  %s1472_s20 = scalar_lea.sflag [#allocation4], %s1471_s21 }
 0x9d3   : > { %p1814_p7 = pneg %p1813_p6 }
 0x9d5   : > { %1984 = dma.done.wait (%p1814_p7), %s1472_s20, 128  }
 0x9d6   : > { %1986 = vsyncadd (%p1814_p7), %s1472_s20, 4294967168  ;;  %s26_s15 = sadd.s32 1, %s2504_s14   ;;  %s2507_s25 = sld [smem:[#allocation7_spill]] }
 0x9d7   : > { %p23_p8 = scmp.ge.s32.totalorder %s26_s15, 6   ;;  %s2508_s26 = sld [smem:[#allocation8_spill]] }
 0x9d8   : > { %s2509_s27 = sld [smem:[#allocation18_spill]] }
 0x9d9   : > { %s2510_s28 = sld [smem:[#allocation11_spill]]  ;;  %25 = sbr.rel (!%p23_p8) target bundleno = 13 (0xd), region = 151 }
 0x9da   : > { %s2511_s29 = sld [smem:[#allocation12_spill]] }
 0x9db   : > { %s2512_s30 = sld [smem:[#allocation14_spill]] }
 0x9dc   : > { %s2513_s14 = sld [smem:[#allocation16_spill]] }
 0x9de   :  { %1477 = vsyncpa [#allocation4], 1 }
 0x9df   :  { %1479 = vsyncpa [#allocation4 + $0x1], 1 }

</bundles_post_ra>
